<compile_context>
chip_gen: v6e
topology: v6e:2x2x1
jax: 0.10.0
libtpu: 0.0.40
codegen_flags: <defaults>
</compile_context>

<pallas_src>
import jax
import jax.numpy as jnp
from jax import lax
from jax.experimental import pallas as pl
from jax.experimental.pallas import tpu as pltpu

# ---- static problem sizes (small, consistent with the module) ----
B = 2            # batch
S = 8            # sequence length
H = 32           # hidden_size
NUM_HEADS = 4
HEAD_DIM = H // NUM_HEADS
BS = B * S
LN_EPS = 1e-5


# --------------------------------------------------------------------------
# Kernel: whole (B, S) problem in ONE invocation; everything lives in VMEM.
# --------------------------------------------------------------------------
def mha_kernel(xcat_ref, keep_ref, neg_ref, wqkv_ref, bqkv_ref,
               wo_ref, bo_ref, gamma_ref, beta_ref,
               out_ref, attn_ref, ctx_ref):
    xcat = xcat_ref[...]                  # (BS, 3H) = [q | k | v] rows
    residual = xcat[:, :H]                # original q input (BS, H)

    # Fused Q/K/V projection: one MXU push against the block-diagonal weight.
    qkv = jnp.dot(xcat, wqkv_ref[...],
                  preferred_element_type=jnp.float32) + bqkv_ref[...]   # (BS, 3H)

    keep_scaled = keep_ref[...]           # (BS, BS): 1/sqrt(d) where kept, else 0
    neg = neg_ref[...]                    # (BS, BS): 0 kept, -1e9 masked, -1e30 cross-batch

    for h in range(NUM_HEADS):            # static unroll over heads
        lo = h * HEAD_DIM
        qh = qkv[:, lo:lo + HEAD_DIM]                     # (BS, d)
        kh = qkv[:, H + lo:H + lo + HEAD_DIM]             # (BS, d)
        vh = qkv[:, 2 * H + lo:2 * H + lo + HEAD_DIM]     # (BS, d)

        # scores: contract last dims directly (no explicit transpose).
        s = lax.dot_general(qh, kh, (((1,), (1,)), ((), ())),
                            preferred_element_type=jnp.float32)          # (BS, BS)
        s = s * keep_scaled + neg          # scale + mask + cross-batch block-diag

        # numerically stable softmax (cross-batch entries underflow to exactly 0)
        m = jnp.max(s, axis=-1, keepdims=True)
        e = jnp.exp(s - m)
        denom = jnp.sum(e, axis=-1, keepdims=True)
        attn = e * pl.reciprocal(denom, approx=False)

        # Store this head's attention directly into the lane-dense output slab.
        attn_ref[:, h * BS:(h + 1) * BS] = attn

        # Stage this head's context into the (BS, H) scratch slab.
        ctx_ref[:, lo:lo + HEAD_DIM] = jnp.dot(attn, vh,
                                               preferred_element_type=jnp.float32)

    # Single fused output projection (K=H) + bias added once.
    proj = jnp.dot(ctx_ref[...], wo_ref[...],
                   preferred_element_type=jnp.float32) + bo_ref[...]      # (BS, H)

    # residual + LayerNorm
    x = proj + residual
    mean = jnp.mean(x, axis=-1, keepdims=True)
    var = jnp.mean((x - mean) ** 2, axis=-1, keepdims=True)
    xn = (x - mean) * lax.rsqrt(var + LN_EPS)
    out_ref[...] = xn * gamma_ref[...] + beta_ref[...]


# --------------------------------------------------------------------------
# One-time constant preparation (hoisted out of the per-call dispatch path).
# --------------------------------------------------------------------------
def precompute_fused_weights(params):
    """Block-diagonal fused QKV weight + fused bias; built once per parameter set."""
    (wq_t, bq, wk_t, bk, wv_t, bv, wo_t, bo, gamma, beta) = params
    w_qkv = jnp.zeros((3 * H, 3 * H), jnp.float32)
    w_qkv = (w_qkv.at[0:H, 0:H].set(wq_t)
                  .at[H:2 * H, H:2 * H].set(wk_t)
                  .at[2 * H:3 * H, 2 * H:3 * H].set(wv_t))
    b_qkv = jnp.concatenate([bq, bk, bv], axis=1)                         # (1, 3H)
    return (w_qkv, b_qkv, wo_t, bo, gamma, beta)


def precompute_mask_bias(mask):
    """Scaled keep-mask + additive bias; built once per mask (block-diag over batch)."""
    scale = 1.0 / jnp.sqrt(jnp.float32(HEAD_DIM))
    same = jnp.broadcast_to(jnp.eye(B, dtype=bool)[:, None, :, None], (B, S, B, S))
    keep = same & jnp.broadcast_to((mask != 0)[:, :, None, :], (B, S, B, S))
    keep2 = keep.reshape(BS, BS)
    same2 = same.reshape(BS, BS)
    keep_scaled = keep2.astype(jnp.float32) * scale
    neg = jnp.where(keep2, 0.0,
                    jnp.where(same2, -1e9, -1e30)).astype(jnp.float32)
    return (keep_scaled, neg)


# --------------------------------------------------------------------------
# Dispatch wrapper: only lane-concat of inputs + one pallas_call.
# --------------------------------------------------------------------------
def multi_head_attention(q, k, v, fused_weights, mask_bias):
    (w_qkv, b_qkv, wo_t, bo, gamma, beta) = fused_weights
    (keep_scaled, neg) = mask_bias

    # Fold batch into rows and fuse q/k/v inputs along lanes.
    xcat = jnp.concatenate([q.reshape(BS, H), k.reshape(BS, H), v.reshape(BS, H)],
                           axis=1)                                        # (BS, 3H)

    vmem_spec = pl.BlockSpec(memory_space=pltpu.MemorySpace.VMEM)
    out_flat, attn_slab = pl.pallas_call(
        mha_kernel,
        out_shape=(
            jax.ShapeDtypeStruct((BS, H), jnp.float32),
            jax.ShapeDtypeStruct((BS, NUM_HEADS * BS), jnp.float32),   # lane-dense
        ),
        in_specs=[vmem_spec] * 9,
        out_specs=(vmem_spec, vmem_spec),
        scratch_shapes=[pltpu.VMEM((BS, H), jnp.float32)],             # ctx staging slab
    )(xcat, keep_scaled, neg, w_qkv, b_qkv, wo_t, bo, gamma, beta)

    out = out_flat.reshape(B, S, H)
    # attn_slab columns are [head, batch, key] flattened; extract per-batch diagonal blocks.
    a5 = attn_slab.reshape(B, S, NUM_HEADS, B, S)
    attn = jnp.stack([a5[bb, :, :, bb, :] for bb in range(B)], axis=0)    # (B, S, NH, S)
    attn = attn.transpose(0, 2, 1, 3)                                     # (B, NH, S, S)
    return out, attn


# --------------------------------------------------------------------------
# Pure-JAX reference mirroring the PyTorch module (inference mode).
# --------------------------------------------------------------------------
def reference(q, k, v, mask, params):
    (wq_t, bq, wk_t, bk, wv_t, bv, wo_t, bo, gamma, beta) = params
    qp = q @ wq_t + bq[0]
    kp = k @ wk_t + bk[0]
    vp = v @ wv_t + bv[0]

    def split(x):  # (B,S,H) -> (B,NH,S,d)
        return x.reshape(B, S, NUM_HEADS, HEAD_DIM).transpose(0, 2, 1, 3)

    qh, kh, vh = split(qp), split(kp), split(vp)
    scores = jnp.einsum('bhid,bhjd->bhij', qh, kh) / jnp.sqrt(jnp.float32(HEAD_DIM))
    scores = jnp.where(mask[:, None, :, :] == 0, -1e9, scores)
    attn = jax.nn.softmax(scores, axis=-1)
    ctx = jnp.einsum('bhij,bhjd->bhid', attn, vh)
    ctx = ctx.transpose(0, 2, 1, 3).reshape(B, S, H)
    proj = ctx @ wo_t + bo[0]
    x = proj + q
    mean = jnp.mean(x, axis=-1, keepdims=True)
    var = jnp.mean((x - mean) ** 2, axis=-1, keepdims=True)
    out = (x - mean) / jnp.sqrt(var + LN_EPS) * gamma[0] + beta[0]
    return out, attn


def init_params(key):
    ks = jax.random.split(key, 8)
    sc = 1.0 / jnp.sqrt(jnp.float32(H))
    # Linear weights stored already transposed so the kernel does x @ W_t + b.
    wq_t = jax.random.uniform(ks[0], (H, H), jnp.float32, -sc, sc)
    wk_t = jax.random.uniform(ks[1], (H, H), jnp.float32, -sc, sc)
    wv_t = jax.random.uniform(ks[2], (H, H), jnp.float32, -sc, sc)
    wo_t = jax.random.uniform(ks[3], (H, H), jnp.float32, -sc, sc)
    bq = jax.random.uniform(ks[4], (1, H), jnp.float32, -sc, sc)
    bk = jax.random.uniform(ks[5], (1, H), jnp.float32, -sc, sc)
    bv = jax.random.uniform(ks[6], (1, H), jnp.float32, -sc, sc)
    bo = jax.random.uniform(ks[7], (1, H), jnp.float32, -sc, sc)
    gamma = jnp.ones((1, H), jnp.float32)
    beta = jnp.zeros((1, H), jnp.float32)
    return (wq_t, bq, wk_t, bk, wv_t, bv, wo_t, bo, gamma, beta)


if __name__ == "__main__":
    key = jax.random.PRNGKey(0)
    kq, kk, kv, kp = jax.random.split(key, 4)

    q = jax.random.normal(kq, (B, S, H), jnp.float32)
    k = jax.random.normal(kk, (B, S, H), jnp.float32)
    v = jax.random.normal(kv, (B, S, H), jnp.float32)
    # causal-style mask example: 1 = keep, 0 = masked
    mask = jnp.tril(jnp.ones((S, S), jnp.int32))[None].repeat(B, axis=0)

    params = init_params(kp)

    # One-time constant preparation (outside the per-call dispatch path).
    fused_weights = jax.tree_util.tree_map(jax.block_until_ready,
                                           precompute_fused_weights(params))
    mask_bias = jax.tree_util.tree_map(jax.block_until_ready,
                                       precompute_mask_bias(mask))

    out, attn = multi_head_attention(q, k, v, fused_weights, mask_bias)
    out = jax.block_until_ready(out)
    attn = jax.block_until_ready(attn)

    ref_out, ref_attn = reference(q, k, v, mask, params)
    assert out.shape == (B, S, H) and attn.shape == (B, NUM_HEADS, S, S)
    assert jnp.allclose(out, ref_out, atol=1e-4, rtol=1e-4)
    assert jnp.allclose(attn, ref_attn, atol=1e-5, rtol=1e-5)

    print("KERNEL_OK")
</pallas_src>

<mosaic_0001>
module attributes {stable_mosaic.version = 11 : i64} {
  func.func @mha_kernel(%arg0: memref<16x96xf32, #tpu.memory_space<vmem>>, %arg1: memref<16x16xf32, #tpu.memory_space<vmem>>, %arg2: memref<16x16xf32, #tpu.memory_space<vmem>>, %arg3: memref<96x96xf32, #tpu.memory_space<vmem>>, %arg4: memref<1x96xf32, #tpu.memory_space<vmem>>, %arg5: memref<32x32xf32, #tpu.memory_space<vmem>>, %arg6: memref<1x32xf32, #tpu.memory_space<vmem>>, %arg7: memref<1x32xf32, #tpu.memory_space<vmem>>, %arg8: memref<1x32xf32, #tpu.memory_space<vmem>>, %arg9: memref<16x32xf32, #tpu.memory_space<vmem>>, %arg10: memref<16x64xf32, #tpu.memory_space<vmem>>, %arg11: memref<16x32xf32, #tpu.memory_space<vmem>>) attributes {dimension_semantics = [], scalar_prefetch = 0 : i64, scratch_operands = 1 : i64, tpu.core_type = #tpu.core_type<tc>} {
    %c0 = arith.constant 0 : index
    %c0_0 = arith.constant 0 : index
    %0 = vector.load %arg0[%c0, %c0_0] : memref<16x96xf32, #tpu.memory_space<vmem>>, vector<16x96xf32>
    %1 = vector.extract_strided_slice %0 {offsets = [0, 0], sizes = [16, 32], strides = [1, 1]} : vector<16x96xf32> to vector<16x32xf32>
    %c0_1 = arith.constant 0 : index
    %c0_2 = arith.constant 0 : index
    %2 = vector.load %arg3[%c0_1, %c0_2] : memref<96x96xf32, #tpu.memory_space<vmem>>, vector<96x96xf32>
    %cst = arith.constant dense<0.000000e+00> : vector<16x96xf32>
    %3 = tpu.matmul %0, %2, %cst {dimension_numbers = #tpu.dot_dimension_numbers<[1], [0], [0], [1], [0, 0, 1, 1], [], []>} : vector<16x96xf32>, vector<96x96xf32>, vector<16x96xf32> -> vector<16x96xf32>
    %c0_3 = arith.constant 0 : index
    %c0_4 = arith.constant 0 : index
    %4 = vector.load %arg4[%c0_3, %c0_4] : memref<1x96xf32, #tpu.memory_space<vmem>>, vector<1x96xf32>
    %5 = vector.broadcast %4 : vector<1x96xf32> to vector<16x96xf32>
    %6 = arith.addf %3, %5 : vector<16x96xf32>
    %c0_5 = arith.constant 0 : index
    %c0_6 = arith.constant 0 : index
    %7 = vector.load %arg1[%c0_5, %c0_6] : memref<16x16xf32, #tpu.memory_space<vmem>>, vector<16x16xf32>
    %c0_7 = arith.constant 0 : index
    %c0_8 = arith.constant 0 : index
    %8 = vector.load %arg2[%c0_7, %c0_8] : memref<16x16xf32, #tpu.memory_space<vmem>>, vector<16x16xf32>
    %9 = vector.extract_strided_slice %6 {offsets = [0, 0], sizes = [16, 8], strides = [1, 1]} : vector<16x96xf32> to vector<16x8xf32>
    %10 = vector.extract_strided_slice %6 {offsets = [0, 32], sizes = [16, 8], strides = [1, 1]} : vector<16x96xf32> to vector<16x8xf32>
    %11 = vector.extract_strided_slice %6 {offsets = [0, 64], sizes = [16, 8], strides = [1, 1]} : vector<16x96xf32> to vector<16x8xf32>
    %cst_9 = arith.constant dense<0.000000e+00> : vector<16x16xf32>
    %12 = tpu.matmul %9, %10, %cst_9 {dimension_numbers = #tpu.dot_dimension_numbers<[1], [1], [0], [0], [0, 0, 1, 0], [], []>} : vector<16x8xf32>, vector<16x8xf32>, vector<16x16xf32> -> vector<16x16xf32>
    %13 = arith.mulf %12, %7 : vector<16x16xf32>
    %14 = arith.addf %13, %8 : vector<16x16xf32>
    %cst_10 = arith.constant dense<0xFF800000> : vector<16xf32>
    %15 = vector.multi_reduction <maximumf>, %14, %cst_10 [1] : vector<16x16xf32> to vector<16xf32>
    %16 = vector.shape_cast %15 : vector<16xf32> to vector<16x1xf32>
    %17 = vector.broadcast %16 : vector<16x1xf32> to vector<16x16xf32>
    %18 = arith.subf %14, %17 : vector<16x16xf32>
    %19 = math.exp %18 : vector<16x16xf32>
    %cst_11 = arith.constant dense<0.000000e+00> : vector<16xf32>
    %20 = vector.multi_reduction <add>, %19, %cst_11 [1] : vector<16x16xf32> to vector<16xf32>
    %21 = vector.shape_cast %20 : vector<16xf32> to vector<16x1xf32>
    %22 = tpu.reciprocal %21 : vector<16x1xf32> -> vector<16x1xf32>
    %23 = vector.broadcast %22 : vector<16x1xf32> to vector<16x16xf32>
    %24 = arith.mulf %19, %23 : vector<16x16xf32>
    %c0_12 = arith.constant 0 : index
    %c0_13 = arith.constant 0 : index
    %25 = vector.load %arg10[%c0_12, %c0_13] : memref<16x64xf32, #tpu.memory_space<vmem>>, vector<16x16xf32>
    tpu.vector_store %arg10[%c0_12, %c0_13], %24 {strides = array<i32>} : memref<16x64xf32, #tpu.memory_space<vmem>>, vector<16x16xf32>,
    %cst_14 = arith.constant dense<0.000000e+00> : vector<16x8xf32>
    %26 = tpu.matmul %24, %11, %cst_14 {dimension_numbers = #tpu.dot_dimension_numbers<[1], [0], [0], [1], [0, 0, 1, 1], [], []>} : vector<16x16xf32>, vector<16x8xf32>, vector<16x8xf32> -> vector<16x8xf32>
    %c0_15 = arith.constant 0 : index
    %c0_16 = arith.constant 0 : index
    %27 = vector.load %arg11[%c0_15, %c0_16] : memref<16x32xf32, #tpu.memory_space<vmem>>, vector<16x8xf32>
    tpu.vector_store %arg11[%c0_15, %c0_16], %26 {strides = array<i32>} : memref<16x32xf32, #tpu.memory_space<vmem>>, vector<16x8xf32>,
    %28 = vector.extract_strided_slice %6 {offsets = [0, 8], sizes = [16, 8], strides = [1, 1]} : vector<16x96xf32> to vector<16x8xf32>
    %29 = vector.extract_strided_slice %6 {offsets = [0, 40], sizes = [16, 8], strides = [1, 1]} : vector<16x96xf32> to vector<16x8xf32>
    %30 = vector.extract_strided_slice %6 {offsets = [0, 72], sizes = [16, 8], strides = [1, 1]} : vector<16x96xf32> to vector<16x8xf32>
    %cst_17 = arith.constant dense<0.000000e+00> : vector<16x16xf32>
    %31 = tpu.matmul %28, %29, %cst_17 {dimension_numbers = #tpu.dot_dimension_numbers<[1], [1], [0], [0], [0, 0, 1, 0], [], []>} : vector<16x8xf32>, vector<16x8xf32>, vector<16x16xf32> -> vector<16x16xf32>
    %32 = arith.mulf %31, %7 : vector<16x16xf32>
    %33 = arith.addf %32, %8 : vector<16x16xf32>
    %cst_18 = arith.constant dense<0xFF800000> : vector<16xf32>
    %34 = vector.multi_reduction <maximumf>, %33, %cst_18 [1] : vector<16x16xf32> to vector<16xf32>
    %35 = vector.shape_cast %34 : vector<16xf32> to vector<16x1xf32>
    %36 = vector.broadcast %35 : vector<16x1xf32> to vector<16x16xf32>
    %37 = arith.subf %33, %36 : vector<16x16xf32>
    %38 = math.exp %37 : vector<16x16xf32>
    %cst_19 = arith.constant dense<0.000000e+00> : vector<16xf32>
    %39 = vector.multi_reduction <add>, %38, %cst_19 [1] : vector<16x16xf32> to vector<16xf32>
    %40 = vector.shape_cast %39 : vector<16xf32> to vector<16x1xf32>
    %41 = tpu.reciprocal %40 : vector<16x1xf32> -> vector<16x1xf32>
    %42 = vector.broadcast %41 : vector<16x1xf32> to vector<16x16xf32>
    %43 = arith.mulf %38, %42 : vector<16x16xf32>
    %c0_20 = arith.constant 0 : index
    %c16 = arith.constant 16 : index
    %44 = vector.load %arg10[%c0_20, %c16] : memref<16x64xf32, #tpu.memory_space<vmem>>, vector<16x16xf32>
    tpu.vector_store %arg10[%c0_20, %c16], %43 {strides = array<i32>} : memref<16x64xf32, #tpu.memory_space<vmem>>, vector<16x16xf32>,
    %cst_21 = arith.constant dense<0.000000e+00> : vector<16x8xf32>
    %45 = tpu.matmul %43, %30, %cst_21 {dimension_numbers = #tpu.dot_dimension_numbers<[1], [0], [0], [1], [0, 0, 1, 1], [], []>} : vector<16x16xf32>, vector<16x8xf32>, vector<16x8xf32> -> vector<16x8xf32>
    %c0_22 = arith.constant 0 : index
    %c8 = arith.constant 8 : index
    %46 = vector.load %arg11[%c0_22, %c8] : memref<16x32xf32, #tpu.memory_space<vmem>>, vector<16x8xf32>
    tpu.vector_store %arg11[%c0_22, %c8], %45 {strides = array<i32>} : memref<16x32xf32, #tpu.memory_space<vmem>>, vector<16x8xf32>,
    %47 = vector.extract_strided_slice %6 {offsets = [0, 16], sizes = [16, 8], strides = [1, 1]} : vector<16x96xf32> to vector<16x8xf32>
    %48 = vector.extract_strided_slice %6 {offsets = [0, 48], sizes = [16, 8], strides = [1, 1]} : vector<16x96xf32> to vector<16x8xf32>
    %49 = vector.extract_strided_slice %6 {offsets = [0, 80], sizes = [16, 8], strides = [1, 1]} : vector<16x96xf32> to vector<16x8xf32>
    %cst_23 = arith.constant dense<0.000000e+00> : vector<16x16xf32>
    %50 = tpu.matmul %47, %48, %cst_23 {dimension_numbers = #tpu.dot_dimension_numbers<[1], [1], [0], [0], [0, 0, 1, 0], [], []>} : vector<16x8xf32>, vector<16x8xf32>, vector<16x16xf32> -> vector<16x16xf32>
    %51 = arith.mulf %50, %7 : vector<16x16xf32>
    %52 = arith.addf %51, %8 : vector<16x16xf32>
    %cst_24 = arith.constant dense<0xFF800000> : vector<16xf32>
    %53 = vector.multi_reduction <maximumf>, %52, %cst_24 [1] : vector<16x16xf32> to vector<16xf32>
    %54 = vector.shape_cast %53 : vector<16xf32> to vector<16x1xf32>
    %55 = vector.broadcast %54 : vector<16x1xf32> to vector<16x16xf32>
    %56 = arith.subf %52, %55 : vector<16x16xf32>
    %57 = math.exp %56 : vector<16x16xf32>
    %cst_25 = arith.constant dense<0.000000e+00> : vector<16xf32>
    %58 = vector.multi_reduction <add>, %57, %cst_25 [1] : vector<16x16xf32> to vector<16xf32>
    %59 = vector.shape_cast %58 : vector<16xf32> to vector<16x1xf32>
    %60 = tpu.reciprocal %59 : vector<16x1xf32> -> vector<16x1xf32>
    %61 = vector.broadcast %60 : vector<16x1xf32> to vector<16x16xf32>
    %62 = arith.mulf %57, %61 : vector<16x16xf32>
    %c0_26 = arith.constant 0 : index
    %c32 = arith.constant 32 : index
    %63 = vector.load %arg10[%c0_26, %c32] : memref<16x64xf32, #tpu.memory_space<vmem>>, vector<16x16xf32>
    tpu.vector_store %arg10[%c0_26, %c32], %62 {strides = array<i32>} : memref<16x64xf32, #tpu.memory_space<vmem>>, vector<16x16xf32>,
    %cst_27 = arith.constant dense<0.000000e+00> : vector<16x8xf32>
    %64 = tpu.matmul %62, %49, %cst_27 {dimension_numbers = #tpu.dot_dimension_numbers<[1], [0], [0], [1], [0, 0, 1, 1], [], []>} : vector<16x16xf32>, vector<16x8xf32>, vector<16x8xf32> -> vector<16x8xf32>
    %c0_28 = arith.constant 0 : index
    %c16_29 = arith.constant 16 : index
    %65 = vector.load %arg11[%c0_28, %c16_29] : memref<16x32xf32, #tpu.memory_space<vmem>>, vector<16x8xf32>
    tpu.vector_store %arg11[%c0_28, %c16_29], %64 {strides = array<i32>} : memref<16x32xf32, #tpu.memory_space<vmem>>, vector<16x8xf32>,
    %66 = vector.extract_strided_slice %6 {offsets = [0, 24], sizes = [16, 8], strides = [1, 1]} : vector<16x96xf32> to vector<16x8xf32>
    %67 = vector.extract_strided_slice %6 {offsets = [0, 56], sizes = [16, 8], strides = [1, 1]} : vector<16x96xf32> to vector<16x8xf32>
    %68 = vector.extract_strided_slice %6 {offsets = [0, 88], sizes = [16, 8], strides = [1, 1]} : vector<16x96xf32> to vector<16x8xf32>
    %cst_30 = arith.constant dense<0.000000e+00> : vector<16x16xf32>
    %69 = tpu.matmul %66, %67, %cst_30 {dimension_numbers = #tpu.dot_dimension_numbers<[1], [1], [0], [0], [0, 0, 1, 0], [], []>} : vector<16x8xf32>, vector<16x8xf32>, vector<16x16xf32> -> vector<16x16xf32>
    %70 = arith.mulf %69, %7 : vector<16x16xf32>
    %71 = arith.addf %70, %8 : vector<16x16xf32>
    %cst_31 = arith.constant dense<0xFF800000> : vector<16xf32>
    %72 = vector.multi_reduction <maximumf>, %71, %cst_31 [1] : vector<16x16xf32> to vector<16xf32>
    %73 = vector.shape_cast %72 : vector<16xf32> to vector<16x1xf32>
    %74 = vector.broadcast %73 : vector<16x1xf32> to vector<16x16xf32>
    %75 = arith.subf %71, %74 : vector<16x16xf32>
    %76 = math.exp %75 : vector<16x16xf32>
    %cst_32 = arith.constant dense<0.000000e+00> : vector<16xf32>
    %77 = vector.multi_reduction <add>, %76, %cst_32 [1] : vector<16x16xf32> to vector<16xf32>
    %78 = vector.shape_cast %77 : vector<16xf32> to vector<16x1xf32>
    %79 = tpu.reciprocal %78 : vector<16x1xf32> -> vector<16x1xf32>
    %80 = vector.broadcast %79 : vector<16x1xf32> to vector<16x16xf32>
    %81 = arith.mulf %76, %80 : vector<16x16xf32>
    %c0_33 = arith.constant 0 : index
    %c48 = arith.constant 48 : index
    %82 = vector.load %arg10[%c0_33, %c48] : memref<16x64xf32, #tpu.memory_space<vmem>>, vector<16x16xf32>
    tpu.vector_store %arg10[%c0_33, %c48], %81 {strides = array<i32>} : memref<16x64xf32, #tpu.memory_space<vmem>>, vector<16x16xf32>,
    %cst_34 = arith.constant dense<0.000000e+00> : vector<16x8xf32>
    %83 = tpu.matmul %81, %68, %cst_34 {dimension_numbers = #tpu.dot_dimension_numbers<[1], [0], [0], [1], [0, 0, 1, 1], [], []>} : vector<16x16xf32>, vector<16x8xf32>, vector<16x8xf32> -> vector<16x8xf32>
    %c0_35 = arith.constant 0 : index
    %c24 = arith.constant 24 : index
    %84 = vector.load %arg11[%c0_35, %c24] : memref<16x32xf32, #tpu.memory_space<vmem>>, vector<16x8xf32>
    tpu.vector_store %arg11[%c0_35, %c24], %83 {strides = array<i32>} : memref<16x32xf32, #tpu.memory_space<vmem>>, vector<16x8xf32>,
    %c0_36 = arith.constant 0 : index
    %c0_37 = arith.constant 0 : index
    %85 = vector.load %arg11[%c0_36, %c0_37] : memref<16x32xf32, #tpu.memory_space<vmem>>, vector<16x32xf32>
    %c0_38 = arith.constant 0 : index
    %c0_39 = arith.constant 0 : index
    %86 = vector.load %arg5[%c0_38, %c0_39] : memref<32x32xf32, #tpu.memory_space<vmem>>, vector<32x32xf32>
    %cst_40 = arith.constant dense<0.000000e+00> : vector<16x32xf32>
    %87 = tpu.matmul %85, %86, %cst_40 {dimension_numbers = #tpu.dot_dimension_numbers<[1], [0], [0], [1], [0, 0, 1, 1], [], []>} : vector<16x32xf32>, vector<32x32xf32>, vector<16x32xf32> -> vector<16x32xf32>
    %c0_41 = arith.constant 0 : index
    %c0_42 = arith.constant 0 : index
    %88 = vector.load %arg6[%c0_41, %c0_42] : memref<1x32xf32, #tpu.memory_space<vmem>>, vector<1x32xf32>
    %89 = vector.broadcast %88 : vector<1x32xf32> to vector<16x32xf32>
    %90 = arith.addf %87, %89 : vector<16x32xf32>
    %91 = arith.addf %90, %1 : vector<16x32xf32>
    %cst_43 = arith.constant dense<0.000000e+00> : vector<16xf32>
    %92 = vector.multi_reduction <add>, %91, %cst_43 [1] : vector<16x32xf32> to vector<16xf32>
    %93 = vector.shape_cast %92 : vector<16xf32> to vector<16x1xf32>
    %cst_44 = arith.constant 3.200000e+01 : f32
    %94 = vector.broadcast %cst_44 : f32 to vector<16x1xf32>
    %95 = arith.divf %93, %94 : vector<16x1xf32>
    %96 = vector.broadcast %95 : vector<16x1xf32> to vector<16x32xf32>
    %97 = arith.subf %91, %96 : vector<16x32xf32>
    %98 = arith.mulf %97, %97 : vector<16x32xf32>
    %cst_45 = arith.constant dense<0.000000e+00> : vector<16xf32>
    %99 = vector.multi_reduction <add>, %98, %cst_45 [1] : vector<16x32xf32> to vector<16xf32>
    %100 = vector.shape_cast %99 : vector<16xf32> to vector<16x1xf32>
    %cst_46 = arith.constant 3.200000e+01 : f32
    %101 = vector.broadcast %cst_46 : f32 to vector<16x1xf32>
    %102 = arith.divf %100, %101 : vector<16x1xf32>
    %103 = vector.broadcast %95 : vector<16x1xf32> to vector<16x32xf32>
    %104 = arith.subf %91, %103 : vector<16x32xf32>
    %cst_47 = arith.constant 9.99999974E-6 : f32
    %105 = vector.broadcast %cst_47 : f32 to vector<16x1xf32>
    %106 = arith.addf %102, %105 : vector<16x1xf32>
    %107 = math.rsqrt %106 : vector<16x1xf32>
    %108 = vector.broadcast %107 : vector<16x1xf32> to vector<16x32xf32>
    %109 = arith.mulf %104, %108 : vector<16x32xf32>
    %c0_48 = arith.constant 0 : index
    %c0_49 = arith.constant 0 : index
    %110 = vector.load %arg7[%c0_48, %c0_49] : memref<1x32xf32, #tpu.memory_space<vmem>>, vector<1x32xf32>
    %111 = vector.broadcast %110 : vector<1x32xf32> to vector<16x32xf32>
    %112 = arith.mulf %109, %111 : vector<16x32xf32>
    %c0_50 = arith.constant 0 : index
    %c0_51 = arith.constant 0 : index
    %113 = vector.load %arg8[%c0_50, %c0_51] : memref<1x32xf32, #tpu.memory_space<vmem>>, vector<1x32xf32>
    %114 = vector.broadcast %113 : vector<1x32xf32> to vector<16x32xf32>
    %115 = arith.addf %112, %114 : vector<16x32xf32>
    %c0_52 = arith.constant 0 : index
    %c0_53 = arith.constant 0 : index
    %116 = vector.load %arg9[%c0_52, %c0_53] : memref<16x32xf32, #tpu.memory_space<vmem>>, vector<16x32xf32>
    tpu.vector_store %arg9[%c0_52, %c0_53], %115 {strides = array<i32>} : memref<16x32xf32, #tpu.memory_space<vmem>>, vector<16x32xf32>,
    return
  }
}

</mosaic_0001>

<bundles_post_ra>
// kernel: tpu_custom_call.1
= control target key start
LH: loop header
LB: loop body
LE: loop exit
PB: predicated region body
PF: predicated region fallthrough
CT: control target
= control target key end

     0   :  { %16 = vsyncpa [#allocation4], 0  ;;  %s1949_s0 = inlined_call_operand.hbm [shape: f32[16,96], index: 0, kind: input, shape index: {}]   ;;  %s1950_s1 = inlined_call_operand.hbm [shape: f32[16,16], index: 1, kind: input, shape index: {}]   ;;  %s1951_s2 = inlined_call_operand.hbm [shape: f32[16,16], index: 2, kind: input, shape index: {}]   ;;  %s1952_s3 = inlined_call_operand.hbm [shape: f32[96,96], index: 3, kind: input, shape index: {}]   ;;  %s1953_s4 = inlined_call_operand.vmem [shape: f32[1,96], index: 4, kind: input, shape index: {}]   ;;  %s1954_s5 = inlined_call_operand.hbm [shape: f32[32,32], index: 5, kind: input, shape index: {}]   ;;  %s1955_s6 = inlined_call_operand.vmem [shape: f32[1,32], index: 6, kind: input, shape index: {}]   ;;  %s1956_s7 = inlined_call_operand.vmem [shape: f32[1,32], index: 7, kind: input, shape index: {}]   ;;  %s1957_s8 = inlined_call_operand.vmem [shape: f32[1,32], index: 8, kind: input, shape index: {}]   ;;  %s1958_s9 = inlined_call_operand.hbm [shape: f32[16,32], index: 9, kind: output, shape index: {0}]   ;;  %s1959_s10 = inlined_call_operand.hbm [shape: f32[16,64], index: 10, kind: output, shape index: {1}]  }
   0x1   :  { %17 = vsyncpa [#allocation7], 0 }
   0x2   :  { %18 = vsyncpa [#allocation10], 0 }
   0x3   :  { %19 = vsyncpa [#allocation5], 0 }
   0x4   :  { %20 = vsyncpa [#allocation14], 0  ;;  %s1657_s13 = smov [#allocation6]   ;;  %s1658_s15 = smov [#allocation9]  }
   0x5   :  { %s38_s14 = sshll.u32 %s1657_s13, 4  ;;  %s62_s16 = sshll.u32 %s1658_s15, 4  ;;  %s39_s14 = int_to_ptr.vmem [resolvable:$true] %s38_s14  ;;  %s63_s16 = int_to_ptr.vmem [resolvable:$true] %s62_s16 }
   0x6   :  { %s1515_s17 = scalar_lea.vmem %s39_s14, 256  ;;  %p1520_p1 = scmp.lt.s32.totalorder %s39_s14, %s39_s14 }
   0x7   :  { %p1516_p0 = scmp.ne.s32.totalorder %s39_s14, %s1515_s17  ;;  %p1521_p2 = scmp.lt.s32.totalorder %s1515_s17, %s1515_s17 }
   0x9   :  { %p1522_p3 = por %p1521_p2, %p1520_p1 }
   0xb   :  { %p1523_p4 = pnand %p1522_p3, %p1516_p0 }
   0xd   :  { %1526 = shalt.err (!%p1523_p4)
}
   0xe   :  { %s1659_s18 = smov 128   ;;  %s1660_s19 = smov 8  }
   0xf   :  { %44 = dma.hbm_to_vmem [thread:$0]  %s1950_s1, 256, %s39_s14, [#allocation7], %s1659_s18, %s1659_s18, %s1660_s19  }
  0x10   :  { %s1535_s22 = scalar_lea.vmem %s63_s16, 1536  ;;  %p1540_p6 = scmp.lt.s32.totalorder %s63_s16, %s63_s16 }
  0x11   :  { %p1536_p5 = scmp.ne.s32.totalorder %s63_s16, %s1535_s22  ;;  %p1541_p7 = scmp.lt.s32.totalorder %s1535_s22, %s1535_s22 }
  0x13   :  { %p1542_p8 = por %p1541_p7, %p1540_p6 }
  0x15   :  { %p1543_p9 = pnand %p1542_p8, %p1536_p5 }
  0x17   :  { %1546 = shalt.err (!%p1543_p9)
}
  0x18   :  { %68 = dma.hbm_to_vmem [thread:$0]  %s1952_s3, 1536, %s63_s16, [#allocation10], %s1659_s18, %s1659_s18, %s1660_s19  }
  0x19   :  { %s1661_s25 = smov [#allocation3]   ;;  %s1662_s27 = smov [#allocation8]  }
  0x1a   :  { %s26_s26 = sshll.u32 %s1661_s25, 4  ;;  %s50_s28 = sshll.u32 %s1662_s27, 4  ;;  %s27_s26 = int_to_ptr.vmem [resolvable:$true] %s26_s26  ;;  %s51_s28 = int_to_ptr.vmem [resolvable:$true] %s50_s28 }
  0x1b   :  { %s1555_s1 = scalar_lea.vmem %s27_s26, 256  ;;  %p1560_p11 = scmp.lt.s32.totalorder %s27_s26, %s27_s26 }
  0x1c   :  { %p1556_p10 = scmp.ne.s32.totalorder %s27_s26, %s1555_s1  ;;  %p1561_p12 = scmp.lt.s32.totalorder %s1555_s1, %s1555_s1 }
  0x1e   :  { %p1562_p13 = por %p1561_p12, %p1560_p11 }
  0x20   :  { %p1563_p0 = pnand %p1562_p13, %p1556_p10 }
  0x22   :  { %1566 = shalt.err (!%p1563_p0)
}
  0x23   :  { %32 = dma.hbm_to_vmem [thread:$0]  %s1949_s0, 256, %s27_s26, [#allocation4], %s1659_s18, %s1659_s18, %s1660_s19  }
  0x24   :  { %s1575_s3 = scalar_lea.vmem %s51_s28, 256  ;;  %p1580_p2 = scmp.lt.s32.totalorder %s51_s28, %s51_s28 }
  0x25   :  { %p1576_p1 = scmp.ne.s32.totalorder %s51_s28, %s1575_s3  ;;  %p1581_p3 = scmp.lt.s32.totalorder %s1575_s3, %s1575_s3 }
  0x27   :  { %p1582_p4 = por %p1581_p3, %p1580_p2 }
  0x29   :  { %p1583_p5 = pnand %p1582_p4, %p1576_p1 }
  0x2b   :  { %1586 = shalt.err (!%p1583_p5)
}
  0x2c   :  { %56 = dma.hbm_to_vmem [thread:$0]  %s1951_s2, 256, %s51_s28, [#allocation7], %s1659_s18, %s1659_s18, %s1660_s19  }
  0x2d   :  { %s1663_s13 = smov [#allocation11]  }
  0x2e   :  { %s76_s14 = sshll.u32 %s1663_s13, 4  ;;  %s77_s14 = int_to_ptr.vmem [resolvable:$true] %s76_s14 }
  0x2f   :  { %s1595_s15 = scalar_lea.vmem %s77_s14, 512  ;;  %p1600_p7 = scmp.lt.s32.totalorder %s77_s14, %s77_s14 }
  0x30   :  { %p1596_p6 = scmp.ne.s32.totalorder %s77_s14, %s1595_s15  ;;  %p1601_p8 = scmp.lt.s32.totalorder %s1595_s15, %s1595_s15 }
  0x32   :  { %p1602_p9 = por %p1601_p8, %p1600_p7 }
  0x34   :  { %p1603_p10 = pnand %p1602_p9, %p1596_p6 }
  0x36   :  { %1606 = shalt.err (!%p1603_p10)
}
  0x37   :  { %82 = dma.hbm_to_vmem [thread:$0]  %s1954_s5, 512, %s77_s14, [#allocation10], %s1659_s18, %s1659_s18, %s1660_s19  }
  0x38   :  { %1647 = dma.done.wait [#allocation4], 256  }
  0x39   :  { %1648 = vsyncadd [#allocation4], 4294967040 }
  0x3a   :  { %1649 = dma.done.wait [#allocation7], 512  }
  0x3b   :  { %1650 = vsyncadd [#allocation7], 4294966784 }
  0x3c   :  { %1651 = dma.done.wait [#allocation10], 2048  }
  0x3d   :  { %1652 = vsyncadd [#allocation10], 4294965248  ;;  %v117_v0 = vld [vmem:[#allocation9 + $0x58] sm:$0xff]  ;;  %v116_v1 = vld [vmem:[#allocation9 + $0x50] sm:$0xff]  ;;  %vm125_vm0 = vcmask 785408   ;;  %vm217_vm1 = vcmask 64512  }
  0x3e   :  { %1354 = vmatprep.subr.mxu0 %v117_v0  ;;  %v115_v2 = vld [vmem:[#allocation9 + $0x48] sm:$0xff]  ;;  %v114_v3 = vld [vmem:[#allocation9 + $0x40] sm:$0xff]  ;;  %v1765_v4 = vld [vmem:[#allocation3] sm:$0xff]  ;;  %s1664_s17 = smov 96   ;;  %vm305_vm2 = vcmask 130048   ;;  %s1666_s20 = smov 80  }
  0x3f   :  { %1355 = vmatpush3.msra.mxu0 %v117_v0  ;;  %1378 = vmatprep.mubr.msk.f32.mxu0 %vm125_vm0, %v1765_v4  ;;  %v113_v5 = vld [vmem:[#allocation9 + $0x38] sm:$0xff]  ;;  %v112_v6 = vld [vmem:[#allocation9 + $0x30] sm:$0xff]  ;;  %v111_v7 = vld [vmem:[#allocation9 + $0x28] sm:$0xff]  ;;  %s1667_s21 = smov 88   ;;  %s1668_s22 = smov 120   ;;  %vm640_vm3 = vcmask 130112  }
  0x40   :  { %1356 = vmatprep.subr.mxu0 %v116_v1  ;;  %v110_v8 = vld [vmem:[#allocation9 + $0x20] sm:$0xff]  ;;  %v109_v9 = vld [vmem:[#allocation9 + $0x18] sm:$0xff]  ;;  %v108_v10 = vld [vmem:[#allocation9 + $0x10] sm:$0xff]  ;;  %s1669_s23 = smov 112   ;;  %s1670_s24 = smov 56   ;;  %vm864_vm4 = vcmask 195712  }
  0x41   :  { %1357 = vmatpush3.msra.mxu0 %v116_v1  ;;  %v107_v11 = vld [vmem:[#allocation9 + $0x8] sm:$0xff]  ;;  %v106_v12 = vld [vmem:[#allocation9] sm:$0xff]  ;;  %v1769_v13 = vld [vmem:[#allocation3 + $0x8] sm:$0xff]  ;;  %s1671_s25 = smov 48   ;;  %s1672_s26 = smov 72   ;;  %vm1088_vm5 = vcmask 261312  }
  0x42   :  { %1358 = vmatprep.subr.mxu0 %v115_v2  ;;  %v1270_v14 = vld [vmem:[%s1953_s4] ss:$0 sm:$0xff]  ;;  %v1790_v21 = vld [vmem:[#allocation6 + $0x8] sm:$0xff]  ;;  %v1794_v25 = vld [vmem:[#allocation8] sm:$0xff]  ;;  %s1665_s4 = smov 64   ;;  %s1673_s27 = smov 104  }
  0x43   :  { %1359 = vmatpush3.msra.mxu0 %v115_v2  ;;  %v1792_v23 = vld [vmem:[#allocation6] sm:$0xff]  ;;  %v1798_v28 = vld [vmem:[#allocation8 + $0x8] sm:$0xff]  ;;  %s1674_s28 = smov 40   ;;  %s1675_s1 = smov 16   ;;  %vm1104_vm6 = vcmask 261120   ;;  %vm544_vm7 = vcmask 261248  }
  0x44   :  { %1360 = vmatprep.subr.mxu0 %v114_v3  ;;  %s1676_s29 = smov 24   ;;  %s1677_s11 = smov 32   ;;  %vm768_vm8 = vcmask 392448   ;;  %vm992_vm9 = vcmask 523648  }
  0x45   :  { %1361 = vmatpush3.msra.mxu0 %v114_v3 }
  0x46   :  { %1362 = vmatprep.subr.mxu0 %v113_v5 }
  0x47   :  { %1363 = vmatpush3.msra.mxu0 %v113_v5 }
  0x48   :  { %1364 = vmatprep.subr.mxu0 %v112_v6 }
  0x49   :  { %1365 = vmatpush3.msra.mxu0 %v112_v6 }
  0x4a   :  { %1366 = vmatprep.subr.mxu0 %v111_v7 }
  0x4b   :  { %1367 = vmatpush3.msra.mxu0 %v111_v7 }
  0x4c   :  { %1368 = vmatprep.subr.mxu0 %v110_v8 }
  0x4d   :  { %1369 = vmatpush3.msra.mxu0 %v110_v8 }
  0x4e   :  { %1370 = vmatprep.subr.mxu0 %v109_v9 }
  0x4f   :  { %1371 = vmatpush3.msra.mxu0 %v109_v9 }
  0x50   :  { %1372 = vmatprep.subr.mxu0 %v108_v10 }
  0x51   :  { %1373 = vmatpush3.msra.mxu0 %v108_v10 }
  0x52   :  { %1374 = vmatprep.subr.mxu0 %v107_v11 }
  0x53   :  { %1375 = vmatpush3.msra.mxu0 %v107_v11 }
  0x54   :  { %1376 = vmatprep.subr.mxu0 %v106_v12 }
  0x55   :  { %1377 = vmatpush3.msra.mxu0 %v106_v12 }
  0x56   :  { %1379 = vmatmul.mubr.msk.f32.vlgmr.msra.gmra.mxu0 %vm125_vm0, %v1769_v13 }
 0x116   :  { %v1380_v15 = vpop.f32.mrf.mxu0 }
 0x117   :  { %v1776_v16 = vadd.f32 %v1380_v15, %v1270_v14 }
 0x118   :  { %v198_v17 = vpop.f32.mrf.mxu0 }
 0x119   :  { %v1778_v18 = vadd.f32 %v1270_v14, %v198_v17  ;;  %215 = vrot.lane.b32.xlu0 %v1776_v16, %s1664_s17 }
 0x11b   :  { %1385 = vmatprep.mubr.msk.f32.mxu1 %vm217_vm1, %v1778_v18 }
 0x11d   :  { %213 = vrot.lane.b32.xlu0 %v1778_v18, %s1664_s17 }
 0x18b   :  { %v216_v19 = vpop.permute.xlu0 %215 }
 0x18c   :  { %1381 = vmatprep.subr.msk.mxu1 %vm217_vm1, %v216_v19 }
 0x18d   :  { %1382 = vmatpush3.xpose.msk.msra.mxu1 %vm217_vm1, %v216_v19 }
 0x18f   :  { %v214_v20 = vpop.permute.xlu0 %213 }
 0x190   :  { %1383 = vmatprep.subr.msk.mxu1 %vm217_vm1, %v214_v20 }
 0x191   :  { %1384 = vmatpush3.xpose.msk.msra.mxu1 %vm217_vm1, %v214_v20 }
 0x194   :  { %1386 = vmatmul.mubr.msk.f32.vlgmr.msra.gmra.mxu1 %vm217_vm1, %v1776_v16 }
 0x254   :  { %v1387_v22 = vpop.f32.mrf.mxu1 }
 0x255   :  { %v302_v26 = vmul.f32 %v1387_v22, %v1790_v21 }
 0x256   :  { %v292_v24 = vpop.f32.mrf.mxu1 }
 0x257   :  { %v301_v27 = vmul.f32 %v292_v24, %v1792_v23  ;;  %v304_v31 = vadd.f32 %v302_v26, %v1798_v28 }
 0x259   :  { %v303_v29 = vadd.f32 %v301_v27, %v1794_v25  ;;  %v309_v32 = vsel %vm305_vm2, %v304_v31, -inf }
 0x25b   :  { %v306_v30 = vsel %vm305_vm2, %v303_v29, -inf }
 0x25c   :  { %307 = vmax.xlane.f32.xlu1 %v306_v30 }
 0x260   :  { %310 = vmax.xlane.f32.xlu1 %v309_v32 }
 0x2e5   :  { %v308_v33 = vpop.xlane.xlu1 %307 }
 0x2e6   :  { %v312_v34 = vsub.f32 %v303_v29, %v308_v33 }
 0x2e8   :  { %v314_v35 = vmul.f32 1.442695, %v312_v34 }
 0x2e9   :  { %v311_v36 = vpop.xlane.xlu1 %310 }
 0x2ea   :  { %1471 = vpow2.f32 %v314_v35  ;;  %v313_v37 = vsub.f32 %v304_v31, %v311_v36 }
 0x2ec   :  { %v316_v38 = vmul.f32 1.442695, %v313_v37 }
 0x2ee   :  { %1473 = vpow2.f32 %v316_v38 }
 0x2f7   :  { %v1472_v39 = vpop.eup %1471 }
 0x2f8   :  { %v318_v40 = vsel %vm305_vm2, %v1472_v39, 0.0 }
 0x2f9   :  { %319 = vadd.xlane.f32.xlu0 %v318_v40 }
 0x2fb   :  { %v1474_v41 = vpop.eup %1473 }
 0x2fc   :  { %v321_v42 = vsel %vm305_vm2, %v1474_v41, 0.0 }
 0x2fd   :  { %322 = vadd.xlane.f32.xlu1 %v321_v42 }
 0x30e   :  { %332 = vrot.lane.b32.xlu1 %v1776_v16, %s1665_s4 }
 0x30f   :  { %649 = vrot.lane.b32.xlu0 %v1776_v16, %s1666_s20 }
 0x312   :  { %330 = vrot.lane.b32.xlu1 %v1778_v18, %s1665_s4 }
 0x316   :  { %425 = vrot.lane.b32.xlu1 %v1776_v16, %s1667_s21 }
 0x31a   :  { %423 = vrot.lane.b32.xlu1 %v1778_v18, %s1667_s21 }
 0x31e   :  { %419 = vrot.lane.b32.xlu1 %v1778_v18, %s1668_s22 }
 0x322   :  { %421 = vrot.lane.b32.xlu1 %v1776_v16, %s1668_s22 }
 0x326   :  { %647 = vrot.lane.b32.xlu1 %v1778_v18, %s1666_s20 }
 0x32a   :  { %643 = vrot.lane.b32.xlu1 %v1778_v18, %s1669_s23 }
 0x32e   :  { %645 = vrot.lane.b32.xlu1 %v1776_v16, %s1669_s23 }
 0x382   :  { %v320_v43 = vpop.xlane.xlu0 %319 }
 0x383   :  { %1475 = vrcp.f32 %v320_v43 }
 0x386   :  { %v650_v44 = vpop.permute.xlu0 %649  ;;  %v323_v45 = vpop.xlane.xlu1 %322 }
 0x387   :  { %1477 = vrcp.f32 %v323_v45  ;;  %1409 = vmatprep.subr.msk.mxu0 %vm217_vm1, %v650_v44 }
 0x388   :  { %1410 = vmatpush3.xpose.msk.msra.mxu0 %vm217_vm1, %v650_v44 }
 0x38a   :  { %v333_v46 = vpop.permute.xlu1 %332 }
 0x38b   :  { %1388 = vmatprep.subr.mxu1 %v333_v46 }
 0x38c   :  { %1389 = vmatpush3.msra.mxu1 %v333_v46 }
 0x38e   :  { %v331_v47 = vpop.permute.xlu1 %330 }
 0x38f   :  { %1390 = vmatprep.subr.mxu1 %v331_v47 }
 0x390   :  { %v1476_v48 = vpop.eup %1475  ;;  %1391 = vmatpush3.msra.mxu1 %v331_v47 }
 0x391   :  { %v326_v49 = vmul.f32 %v1476_v48, %v1472_v39 }
 0x392   :  { %v426_v50 = vpop.permute.xlu1 %425 }
 0x393   :  { %1392 = vmatprep.mubr.msk.f32.mxu1 %vm305_vm2, %v326_v49  ;;  %328 = vst.msk [vmem:[#allocation13] sm:$0xff] %vm305_vm2, %v326_v49  ;;  %1395 = vmatprep.subr.msk.mxu1 %vm217_vm1, %v426_v50 }
 0x394   :  { %v1478_v51 = vpop.eup %1477 }
 0x395   :  { %v327_v52 = vmul.f32 %v1478_v51, %v1474_v41 }
 0x396   :  { %v424_v53 = vpop.permute.xlu1 %423 }
 0x397   :  { %1393 = vmatmul.mubr.msk.f32.vlgmr.msra.gmra.mxu1 %vm305_vm2, %v327_v52  ;;  %329 = vst.msk [vmem:[#allocation13 + $0x8] sm:$0xff] %vm305_vm2, %v327_v52 }
 0x398   :  { %1396 = vmatpush3.xpose.msk.msra.mxu1 %vm217_vm1, %v426_v50 }
 0x399   :  { %1397 = vmatprep.subr.msk.mxu1 %vm217_vm1, %v424_v53 }
 0x39a   :  { %v420_v54 = vpop.permute.xlu1 %419 }
 0x39b   :  { %1399 = vmatprep.mubr.msk.f32.mxu1 %vm217_vm1, %v420_v54 }
 0x39c   :  { %1398 = vmatpush3.xpose.msk.msra.mxu1 %vm217_vm1, %v424_v53 }
 0x39e   :  { %v422_v55 = vpop.permute.xlu1 %421 }
 0x39f   :  { %1400 = vmatmul.mubr.msk.f32.vlgmr.msra.gmra.mxu1 %vm217_vm1, %v422_v55 }
 0x3a2   :  { %v648_v56 = vpop.permute.xlu1 %647 }
 0x3a3   :  { %1411 = vmatprep.subr.msk.mxu0 %vm217_vm1, %v648_v56 }
 0x3a4   :  { %1412 = vmatpush3.xpose.msk.msra.mxu0 %vm217_vm1, %v648_v56 }
 0x3a6   :  { %v644_v57 = vpop.permute.xlu1 %643 }
 0x3a7   :  { %1413 = vmatprep.mubr.msk.f32.mxu0 %vm217_vm1, %v644_v57 }
 0x3aa   :  { %v646_v58 = vpop.permute.xlu1 %645 }
 0x3ab   :  { %1414 = vmatmul.mubr.msk.f32.vlgmr.msra.gmra.mxu0 %vm217_vm1, %v646_v58 }
 0x457   :  { %v1394_v59 = vpop.f32.mrf.mxu1 }
 0x458   :  { %418 = vst.msk [vmem:[#allocation2 + $0x8] sm:$0xff] %vm217_vm1, %v1394_v59 }
 0x459   :  { %v408_v60 = vpop.f32.mrf.mxu1 }
 0x45a   :  { %417 = vst.msk [vmem:[#allocation2] sm:$0xff] %vm217_vm1, %v408_v60 }
 0x45f   :  { %v1401_v61 = vpop.f32.mrf.mxu1 }
 0x460   :  { %v511_v62 = vmul.f32 %v1401_v61, %v1790_v21 }
 0x461   :  { %v501_v63 = vpop.f32.mrf.mxu1 }
 0x462   :  { %v510_v0 = vmul.f32 %v501_v63, %v1792_v23  ;;  %v513_v1 = vadd.f32 %v511_v62, %v1798_v28 }
 0x464   :  { %v517_v2 = vsel %vm305_vm2, %v513_v1, -inf  ;;  %v512_v3 = vadd.f32 %v510_v0, %v1794_v25 }
 0x465   :  { %518 = vmax.xlane.f32.xlu1 %v517_v2 }
 0x466   :  { %v514_v5 = vsel %vm305_vm2, %v512_v3, -inf }
 0x467   :  { %515 = vmax.xlane.f32.xlu0 %v514_v5 }
 0x46b   :  { %v1415_v6 = vpop.f32.mrf.mxu0 }
 0x46c   :  { %v735_v8 = vmul.f32 %v1415_v6, %v1790_v21 }
 0x46d   :  { %v725_v7 = vpop.f32.mrf.mxu0 }
 0x46e   :  { %v734_v9 = vmul.f32 %v725_v7, %v1792_v23  ;;  %v737_v12 = vadd.f32 %v735_v8, %v1798_v28 }
 0x470   :  { %v736_v10 = vadd.f32 %v734_v9, %v1794_v25  ;;  %v741_v14 = vsel %vm305_vm2, %v737_v12, -inf }
 0x472   :  { %v738_v11 = vsel %vm305_vm2, %v736_v10, -inf }
 0x473   :  { %739 = vmax.xlane.f32.xlu0 %v738_v11 }
 0x477   :  { %742 = vmax.xlane.f32.xlu0 %v741_v14 }
 0x4ee   :  { %v519_v32 = vpop.xlane.xlu1 %518 }
 0x4ef   :  { %v521_v33 = vsub.f32 %v513_v1, %v519_v32 }
 0x4f0   :  { %v516_v15 = vpop.xlane.xlu0 %515 }
 0x4f1   :  { %v524_v34 = vmul.f32 1.442695, %v521_v33  ;;  %v520_v35 = vsub.f32 %v512_v3, %v516_v15 }
 0x4f3   :  { %v522_v36 = vmul.f32 1.442695, %v520_v35  ;;  %v1094_v35 = vld [vmem:[#allocation11 + $0x8] sm:$0xff] }
 0x4fc   :  { %v740_v17 = vpop.xlane.xlu0 %739 }
 0x4fd   :  { %v744_v19 = vsub.f32 %v736_v10, %v740_v17 }
 0x4ff   :  { %v746_v20 = vmul.f32 1.442695, %v744_v19 }
 0x500   :  { %v743_v22 = vpop.xlane.xlu0 %742 }
 0x501   :  { %1479 = vpow2.f32 %v746_v20  ;;  %v745_v24 = vsub.f32 %v737_v12, %v743_v22 }
 0x503   :  { %v748_v26 = vmul.f32 1.442695, %v745_v24 }
 0x505   :  { %1481 = vpow2.f32 %v748_v26 }
 0x506   :  { %1483 = vpow2.f32 %v524_v34  ;;  %v1095_v34 = vld [vmem:[#allocation11 + $0x10] sm:$0xff] }
 0x507   :  { %1485 = vpow2.f32 %v522_v36  ;;  %v1093_v36 = vld [vmem:[#allocation11] sm:$0xff] }
 0x50e   :  { %v1480_v27 = vpop.eup %1479 }
 0x50f   :  { %v750_v29 = vsel %vm305_vm2, %v1480_v27, 0.0 }
 0x510   :  { %751 = vadd.xlane.f32.xlu1 %v750_v29 }
 0x512   :  { %v1482_v30 = vpop.eup %1481 }
 0x513   :  { %v753_v31 = vsel %vm305_vm2, %v1482_v30, 0.0  ;;  %v1484_v37 = vpop.eup %1483 }
 0x514   :  { %754 = vadd.xlane.f32.xlu0 %v753_v31  ;;  %v529_v38 = vsel %vm305_vm2, %v1484_v37, 0.0  ;;  %v1486_v39 = vpop.eup %1485 }
 0x515   :  { %v526_v40 = vsel %vm305_vm2, %v1486_v39, 0.0 }
 0x521   :  { %549 = vrot.lane.b32.xlu1 %v1776_v16, %s1670_s24 }
 0x525   :  { %773 = vrot.lane.b32.xlu1 %v1776_v16, %s1671_s25 }
 0x529   :  { %771 = vrot.lane.b32.xlu1 %v1778_v18, %s1671_s25 }
 0x52a   :  { %547 = vrot.lane.b32.xlu0 %v1778_v18, %s1670_s24 }
 0x549   :  { %530 = vadd.xlane.f32.xlu0 %v529_v38 }
 0x54d   :  { %527 = vadd.xlane.f32.xlu1 %v526_v40 }
 0x55e   :  { %871 = vrot.lane.b32.xlu1 %v1778_v18, %s1672_s26 }
 0x55f   :  { %873 = vrot.lane.b32.xlu0 %v1776_v16, %s1672_s26 }
 0x562   :  { %869 = vrot.lane.b32.xlu1 %v1776_v16, %s1673_s27 }
 0x563   :  { %867 = vrot.lane.b32.xlu0 %v1778_v18, %s1673_s27 }
 0x599   :  { %v752_v41 = vpop.xlane.xlu1 %751 }
 0x59a   :  { %1487 = vrcp.f32 %v752_v41 }
 0x59d   :  { %v755_v42 = vpop.xlane.xlu0 %754  ;;  %v550_v43 = vpop.permute.xlu1 %549 }
 0x59e   :  { %1402 = vmatprep.subr.mxu1 %v550_v43 }
 0x59f   :  { %1403 = vmatpush3.msra.mxu1 %v550_v43  ;;  %v1297_v43 = vld [vmem:[%s1955_s6] ss:$0 sm:$0xff]  ;;  %s1678_s6 = smov [#allocation13]  }
 0x5a0   :  { %s1252_s12 = sshll.u32 %s1678_s6, 4  ;;  %s1253_s12 = int_to_ptr.vmem [resolvable:$true] %s1252_s12 }
 0x5a1   :  { %v548_v44 = vpop.permute.xlu0 %547  ;;  %v774_v45 = vpop.permute.xlu1 %773  ;;  %s1607_s13 = scalar_lea.vmem %s1253_s12, 256  ;;  %p1612_p12 = scmp.lt.s32.totalorder %s1253_s12, %s1253_s12 }
 0x5a2   :  { %1404 = vmatprep.subr.mxu1 %v548_v44  ;;  %p1608_p11 = scmp.ne.s32.totalorder %s1253_s12, %s1607_s13  ;;  %p1613_p13 = scmp.lt.s32.totalorder %s1607_s13, %s1607_s13 }
 0x5a3   :  { %1405 = vmatpush3.msra.mxu1 %v548_v44 }
 0x5a4   :  { %1416 = vmatprep.subr.mxu1 %v774_v45  ;;  %p1614_p0 = por %p1613_p13, %p1612_p12 }
 0x5a5   :  { %v772_v46 = vpop.permute.xlu1 %771 }
 0x5a6   :  { %p1615_p1 = pnand %p1614_p0, %p1608_p11 }
 0x5a7   :  { %v1488_v49 = vpop.eup %1487 }
 0x5a8   :  { %v1866_v56 = vmul.f32 %v1488_v49, %v1480_v27 }
 0x5d2   :  { %v531_v47 = vpop.xlane.xlu0 %530 }
 0x5d3   :  { %1489 = vrcp.f32 %v531_v47 }
 0x5d6   :  { %v528_v48 = vpop.xlane.xlu1 %527  ;;  %v874_v53 = vpop.permute.xlu0 %873 }
 0x5d7   :  { %1491 = vrcp.f32 %v528_v48 }
 0x5d8   :  { %1493 = vrcp.f32 %v755_v42 }
 0x5da   :  { %v868_v58 = vpop.permute.xlu0 %867  ;;  %v872_v59 = vpop.permute.xlu1 %871 }
 0x5de   :  { %v870_v60 = vpop.permute.xlu1 %869 }
 0x5e0   :  { %v1490_v50 = vpop.eup %1489 }
 0x5e1   :  { %v1862_v54 = vmul.f32 %v1490_v50, %v1484_v37 }
 0x5e4   :  { %v1492_v51 = vpop.eup %1491 }
 0x5e5   :  { %v1860_v52 = vmul.f32 %v1492_v51, %v1486_v39  ;;  %v1494_v55 = vpop.eup %1493 }
 0x5e6   :  { %v1872_v57 = vmul.f32 %v1494_v55, %v1482_v30 }
 0x5e7   :  { %1406 = vmatprep.mubr.msk.f32.mxu1 %vm305_vm2, %v1860_v52 }
 0x5e8   :  { %1407 = vmatmul.mubr.msk.f32.vlgmr.msra.gmra.mxu1 %vm305_vm2, %v1862_v54 }
 0x5e9   :  { %1417 = vmatpush3.msra.mxu1 %v774_v45  ;;  %1420 = vmatprep.mubr.msk.f32.mxu1 %vm305_vm2, %v1866_v56 }
 0x5ea   :  { %1418 = vmatprep.subr.mxu1 %v772_v46 }
 0x5eb   :  { %1419 = vmatpush3.msra.mxu1 %v772_v46 }
 0x5ec   :  { %1423 = vmatprep.subr.msk.mxu1 %vm217_vm1, %v874_v53  ;;  %1421 = vmatmul.mubr.msk.f32.vlgmr.msra.gmra.mxu1 %vm305_vm2, %v1872_v57 }
 0x5ed   :  { %1424 = vmatpush3.xpose.msk.msra.mxu1 %vm217_vm1, %v874_v53  ;;  %1427 = vmatprep.mubr.msk.f32.mxu1 %vm217_vm1, %v868_v58 }
 0x5ee   :  { %1425 = vmatprep.subr.msk.mxu1 %vm217_vm1, %v872_v59 }
 0x5f1   :  { %1426 = vmatpush3.xpose.msk.msra.mxu1 %vm217_vm1, %v872_v59 }
 0x5f4   :  { %1428 = vmatmul.mubr.msk.f32.vlgmr.msra.gmra.mxu1 %vm217_vm1, %v870_v60 }
 0x6a8   :  { %v1408_v61 = vpop.f32.mrf.mxu1 }
 0x6aa   :  { %v623_v62 = vpop.f32.mrf.mxu1 }
 0x6ac   :  { %v1422_v63 = vpop.f32.mrf.mxu1 }
 0x6ae   :  { %v847_v0 = vpop.f32.mrf.mxu1 }
 0x6b4   :  { %v1429_v1 = vpop.f32.mrf.mxu1 }
 0x6b5   :  { %v959_v2 = vmul.f32 %v1429_v1, %v1790_v21 }
 0x6b6   :  { %v949_v3 = vpop.f32.mrf.mxu1 }
 0x6b7   :  { %v958_v5 = vmul.f32 %v949_v3, %v1792_v23  ;;  %v961_v6 = vadd.f32 %v959_v2, %v1798_v28 }
 0x6b9   :  { %v965_v7 = vsel %vm305_vm2, %v961_v6, -inf  ;;  %v960_v8 = vadd.f32 %v958_v5, %v1794_v25 }
 0x6ba   :  { %966 = vmax.xlane.f32.xlu1 %v965_v7 }
 0x6bb   :  { %v962_v9 = vsel %vm305_vm2, %v960_v8, -inf }
 0x6bc   :  { %963 = vmax.xlane.f32.xlu0 %v962_v9 }
 0x6cb   :  { %997 = vrot.lane.b32.xlu1 %v1776_v16, %s1674_s28 }
 0x6cf   :  { %634 = vrot.lane.b32.xlu1 %v623_v62, %s1660_s19 }
 0x6d3   :  { %636 = vrot.lane.b32.xlu1 %v1408_v61, %s1660_s19 }
 0x6d7   :  { %860 = vrot.lane.b32.xlu1 %v1422_v63, %s1675_s1 }
 0x743   :  { %v967_v21 = vpop.xlane.xlu1 %966 }
 0x744   :  { %v969_v23 = vsub.f32 %v961_v6, %v967_v21 }
 0x745   :  { %v964_v28 = vpop.xlane.xlu0 %963 }
 0x746   :  { %v972_v10 = vmul.f32 1.442695, %v969_v23  ;;  %v968_v25 = vsub.f32 %v960_v8, %v964_v28 }
 0x747   :  { %v998_v11 = vpop.permute.xlu1 %997 }
 0x748   :  { %1495 = vpow2.f32 %v972_v10  ;;  %v970_v12 = vmul.f32 1.442695, %v968_v25  ;;  %1430 = vmatprep.subr.mxu1 %v998_v11 }
 0x749   :  { %1431 = vmatpush3.msra.mxu1 %v998_v11 }
 0x74a   :  { %1497 = vpow2.f32 %v970_v12 }
 0x74b   :  { %v635_v16 = vpop.permute.xlu1 %634 }
 0x74c   :  { %641 = vst.msk [vmem:[#allocation2] sm:$0xff] %vm640_vm3, %v635_v16 }
 0x74f   :  { %v637_v14 = vpop.permute.xlu1 %636 }
 0x750   :  { %642 = vst.msk [vmem:[#allocation2 + $0x8] sm:$0xff] %vm640_vm3, %v637_v14 }
 0x753   :  { %v861_v15 = vpop.permute.xlu1 %860 }
 0x754   :  { %866 = vst.msk [vmem:[#allocation2 + $0x8] sm:$0xff] %vm864_vm4, %v861_v15 }
 0x755   :  { %v1496_v17 = vpop.eup %1495 }
 0x756   :  { %v977_v19 = vsel %vm305_vm2, %v1496_v17, 0.0 }
 0x757   :  { %v1498_v20 = vpop.eup %1497  ;;  %978 = vadd.xlane.f32.xlu0 %v977_v19 }
 0x758   :  { %v974_v22 = vsel %vm305_vm2, %v1498_v20, 0.0 }
 0x75b   :  { %975 = vadd.xlane.f32.xlu0 %v974_v22 }
 0x771   :  { %995 = vrot.lane.b32.xlu0 %v1778_v18, %s1674_s28  ;;  %v1096_v18 = vld [vmem:[#allocation11 + $0x18] sm:$0xff] }
 0x772   :  { %1437 = vmatprep.subr.mxu0 %v1096_v18 }
 0x773   :  { %1438 = vmatpush3.msra.mxu0 %v1096_v18 }
 0x774   :  { %1439 = vmatprep.subr.mxu0 %v1095_v34 }
 0x775   :  { %858 = vrot.lane.b32.xlu0 %v847_v0, %s1675_s1  ;;  %1440 = vmatpush3.msra.mxu0 %v1095_v34 }
 0x776   :  { %1441 = vmatprep.subr.mxu0 %v1094_v35 }
 0x777   :  { %1442 = vmatpush3.msra.mxu0 %v1094_v35 }
 0x778   :  { %1443 = vmatprep.subr.mxu0 %v1093_v36 }
 0x779   :  { %1444 = vmatpush3.msra.mxu0 %v1093_v36 }
 0x7e0   :  { %v979_v24 = vpop.xlane.xlu0 %978 }
 0x7e1   :  { %1499 = vrcp.f32 %v979_v24 }
 0x7e4   :  { %v976_v26 = vpop.xlane.xlu0 %975 }
 0x7e5   :  { %1501 = vrcp.f32 %v976_v26 }
 0x7e8   :  { %v996_v27 = vpop.permute.xlu0 %995 }
 0x7e9   :  { %1432 = vmatprep.subr.mxu1 %v996_v27 }
 0x7ea   :  { %1433 = vmatpush3.msra.mxu1 %v996_v27 }
 0x7ec   :  { %v859_v29 = vpop.permute.xlu0 %858 }
 0x7ed   :  { %865 = vst.msk [vmem:[#allocation2] sm:$0xff] %vm864_vm4, %v859_v29 }
 0x7ee   :  { %v1500_v30 = vpop.eup %1499 }
 0x7ef   :  { %v983_v33 = vmul.f32 %v1500_v30, %v1496_v17 }
 0x7f2   :  { %v1502_v31 = vpop.eup %1501 }
 0x7f3   :  { %v1900_v32 = vmul.f32 %v1502_v31, %v1498_v20 }
 0x7f5   :  { %1434 = vmatprep.mubr.msk.f32.mxu1 %vm305_vm2, %v1900_v32 }
 0x7f6   :  { %1435 = vmatmul.mubr.msk.f32.vlgmr.msra.gmra.mxu1 %vm305_vm2, %v983_v33 }
 0x8b6   :  { %v1436_v37 = vpop.f32.mrf.mxu1 }
 0x8b7   :  { %1084 = vrot.lane.b32.xlu1 %v1436_v37, %s1676_s29 }
 0x8b8   :  { %v1071_v38 = vpop.f32.mrf.mxu1 }
 0x8b9   :  { %1082 = vrot.lane.b32.xlu0 %v1071_v38, %s1676_s29 }
 0x929   :  { %v1085_v39 = vpop.permute.xlu1 %1084 }
 0x92a   :  { %1090 = vst.msk [vmem:[#allocation2 + $0x8] sm:$0xff] %vm1088_vm5, %v1085_v39 }
 0x92b   :  { %v1083_v40 = vpop.permute.xlu0 %1082 }
 0x92c   :  { %1089 = vst.msk [vmem:[#allocation2] sm:$0xff] %vm1088_vm5, %v1083_v40 }
 0x931   :  { %v1092_v42 = vld [vmem:[#allocation2 + $0x8] sm:$0xff] }
 0x933   :  { %v1091_v41 = vld [vmem:[#allocation2] sm:$0xff] }
 0x934   :  { %1445 = vmatprep.mubr.msk.f32.mxu0 %vm1104_vm6, %v1091_v41 }
 0x935   :  { %1446 = vmatmul.mubr.msk.f32.vlgmr.msra.gmra.mxu0 %vm1104_vm6, %v1092_v42 }
 0x9f5   :  { %v1447_v44 = vpop.f32.mrf.mxu0 }
 0x9f6   :  { %v1183_v45 = vadd.f32 %v1447_v44, %v1297_v43 }
 0x9f7   :  { %v1177_v46 = vpop.f32.mrf.mxu0 }
 0x9f8   :  { %v1178_v47 = vadd.f32 %v1297_v43, %v1177_v46  ;;  %v1187_v48 = vadd.f32 %v1183_v45, %v1769_v13 }
 0x9fa   :  { %v1191_v49 = vsel %vm1104_vm6, %v1187_v48, 0.0  ;;  %v1186_v50 = vadd.f32 %v1178_v47, %v1765_v4 }
 0x9fb   :  { %1192 = vadd.xlane.f32.xlu1 %v1191_v49 }
 0x9fc   :  { %v1188_v51 = vsel %vm1104_vm6, %v1186_v50, 0.0 }
 0x9fd   :  { %1189 = vadd.xlane.f32.xlu0 %v1188_v51 }
 0xa0c   :  { %538 = vrot.lane.b32.xlu1 %v1860_v52, %s1675_s1 }
 0xa10   :  { %762 = vrot.lane.b32.xlu1 %v1866_v56, %s1677_s11 }
 0xa14   :  { %764 = vrot.lane.b32.xlu1 %v1872_v57, %s1677_s11 }
 0xa18   :  { %988 = vrot.lane.b32.xlu1 %v983_v33, %s1671_s25 }
 0xa84   :  { %v1193_v53 = vpop.xlane.xlu1 %1192 }
 0xa85   :  { %v1196_v13 = vmul.f32 0.03125, %v1193_v53 }
 0xa86   :  { %v1190_v55 = vpop.xlane.xlu0 %1189 }
 0xa87   :  { %v1195_v58 = vmul.f32 0.03125, %v1190_v55  ;;  %v1198_v59 = vsub.f32 %v1187_v48, %v1196_v13 }
 0xa88   :  { %v539_v4 = vpop.permute.xlu1 %538 }
 0xa89   :  { %v1197_v60 = vsub.f32 %v1186_v50, %v1195_v58  ;;  %545 = vst.msk [vmem:[#allocation13] sm:$0xff] %vm544_vm7, %v539_v4  ;;  %v1200_v57 = vmul.f32 %v1198_v59, %v1198_v59 }
 0xa8b   :  { %v1199_v61 = vmul.f32 %v1197_v60, %v1197_v60  ;;  %v1204_v62 = vsel %vm1104_vm6, %v1200_v57, 0.0 }
 0xa8c   :  { %v763_v52 = vpop.permute.xlu1 %762 }
 0xa8d   :  { %769 = vst.msk [vmem:[#allocation13] sm:$0xff] %vm768_vm8, %v763_v52  ;;  %v1201_v56 = vsel %vm1104_vm6, %v1199_v61, 0.0 }
 0xa8e   :  { %1202 = vadd.xlane.f32.xlu0 %v1201_v56 }
 0xa90   :  { %v765_v2 = vpop.permute.xlu1 %764 }
 0xa92   :  { %1205 = vadd.xlane.f32.xlu0 %v1204_v62 }
 0xa94   :  { %v989_v8 = vpop.permute.xlu1 %988 }
 0xaa8   :  { %540 = vrot.lane.b32.xlu0 %v1862_v54, %s1675_s1 }
 0xaac   :  { %986 = vrot.lane.b32.xlu0 %v1900_v32, %s1671_s25 }
 0xb17   :  { %v1203_v63 = vpop.xlane.xlu0 %1202 }
 0xb18   :  { %v1207_v0 = vmul.f32 0.03125, %v1203_v63 }
 0xb1a   :  { %v1209_v1 = vadd.f32 1e-05, %v1207_v0 }
 0xb1b   :  { %v1206_v3 = vpop.xlane.xlu0 %1205 }
 0xb1c   :  { %1503 = vrsqrt.f32 %v1209_v1  ;;  %v1208_v5 = vmul.f32 0.03125, %v1206_v3 }
 0xb1e   :  { %v1210_v6 = vadd.f32 1e-05, %v1208_v5 }
 0xb1f   :  { %v541_v7 = vpop.permute.xlu0 %540 }
 0xb20   :  { %1505 = vrsqrt.f32 %v1210_v6  ;;  %546 = vst.msk [vmem:[#allocation13 + $0x8] sm:$0xff] %vm544_vm7, %v541_v7 }
 0xb21   :  { %770 = vst.msk [vmem:[#allocation13 + $0x8] sm:$0xff] %vm768_vm8, %v765_v2 }
 0xb22   :  { %994 = vst.msk [vmem:[#allocation13 + $0x8] sm:$0xff] %vm992_vm9, %v989_v8 }
 0xb23   :  { %v987_v54 = vpop.permute.xlu0 %986 }
 0xb24   :  { %993 = vst.msk [vmem:[#allocation13] sm:$0xff] %vm992_vm9, %v987_v54 }
 0xb25   :  { %1618 = shalt.err (!%p1615_p1)
}
 0xb26   :  { %1258 = dma.vmem_to_hbm [thread:$0]  %s1253_s12, 256, %s1959_s10, [#allocation14], %s1659_s18, %s1659_s18, %s1660_s19  }
 0xb27   :  { %v1300_v21 = vld [vmem:[%s1956_s7] ss:$0 sm:$0xff]  ;;  %s1679_s17 = smov [#allocation12]  }
 0xb28   :  { %v1301_v28 = vld [vmem:[%s1957_s8] ss:$0 sm:$0xff]  ;;  %s1240_s4 = sshll.u32 %s1679_s17, 4  ;;  %s1241_s4 = int_to_ptr.vmem [resolvable:$true] %s1240_s4 }
 0xb29   :  { %v1504_v9 = vpop.eup %1503  ;;  %s1627_s10 = scalar_lea.vmem %s1241_s4, 256  ;;  %p1632_p3 = scmp.lt.s32.totalorder %s1241_s4, %s1241_s4 }
 0xb2a   :  { %v1213_v23 = vmul.f32 %v1504_v9, %v1197_v60  ;;  %p1628_p2 = scmp.ne.s32.totalorder %s1241_s4, %s1627_s10  ;;  %p1633_p4 = scmp.lt.s32.totalorder %s1627_s10, %s1627_s10 }
 0xb2c   :  { %v1222_v10 = vmul.f32 %v1300_v21, %v1213_v23  ;;  %p1634_p5 = por %p1633_p4, %p1632_p3 }
 0xb2d   :  { %v1506_v25 = vpop.eup %1505 }
 0xb2e   :  { %v1214_v11 = vmul.f32 %v1506_v25, %v1198_v59  ;;  %v1231_v12 = vadd.f32 %v1301_v28, %v1222_v10  ;;  %p1635_p6 = pnand %p1634_p5, %p1628_p2 }
 0xb30   :  { %v1223_v16 = vmul.f32 %v1300_v21, %v1214_v11  ;;  %1233 = vst.msk [vmem:[#allocation12] sm:$0xff] %vm1104_vm6, %v1231_v12 }
 0xb32   :  { %v1232_v14 = vadd.f32 %v1301_v28, %v1223_v16 }
 0xb34   :  { %1234 = vst.msk [vmem:[#allocation12 + $0x8] sm:$0xff] %vm1104_vm6, %v1232_v14 }
 0xb35   :  { %1638 = shalt.err (!%p1635_p6)
}
 0xb36   :  { %1246 = dma.vmem_to_hbm [thread:$0]  %s1241_s4, 256, %s1958_s9, [#allocation5], %s1659_s18, %s1659_s18, %s1660_s19  }
 0xb37   :  { %1653 = dma.done.wait [#allocation5], 256  }
 0xb38   :  { %1654 = vsyncadd [#allocation5], 4294967040 }
 0xb39   :  { %1655 = dma.done.wait [#allocation14], 256  }
 0xb3a   :  { %1656 = vsyncadd [#allocation14], 4294967040 }
 0xb3b   :  { %1265 = vsyncpa [#allocation4], 1 }
 0xb3c   :  { %1266 = vsyncpa [#allocation7], 1 }
 0xb3d   :  { %1267 = vsyncpa [#allocation10], 1 }
 0xb3e   :  { %1268 = vsyncpa [#allocation5], 1 }
 0xb3f   :  { %1269 = vsyncpa [#allocation14], 1 }

</bundles_post_ra>
